<compile_context>
chip_gen: v6e
topology: v6e:2x2x1
jax: 0.10.0
libtpu: 0.0.40
codegen_flags: <defaults>
</compile_context>

<pallas_src>
import functools

import jax
import jax.numpy as jnp
from jax.experimental import pallas as pl
from jax.experimental.pallas import tpu as pltpu

_LANES = 128
_MAX_TILE_ROWS = 1024  # (2, 1024, 128) f32 input block = 1 MiB; with double
                       # buffering + target block this is ~3 MiB of VMEM.


def _focal_loss_kernel(p_ref, t_ref, out_ref, acc_ref, *, alpha, gamma,
                       n_valid, tile_rows, hard_labels):
    step = pl.program_id(0)

    @pl.when(step == 0)
    def _init():
        acc_ref[0] = jnp.float32(0.0)

    p0 = p_ref[0].astype(jnp.float32)   # (tile_rows, 128) column-0 probabilities
    p1 = p_ref[1].astype(jnp.float32)   # (tile_rows, 128) column-1 probabilities
    t = t_ref[0].astype(jnp.float32)    # (tile_rows, 128) labels; BCE targets are [t, 1-t]

    if hard_labels:
        # t in {0, 1}: one log per probability element instead of two.
        q0 = jnp.where(t > 0.5, p0, 1.0 - p0)
        q1 = jnp.where(t > 0.5, 1.0 - p1, p1)
        bce = -(jnp.maximum(jnp.log(q0), -100.0) +
                jnp.maximum(jnp.log(q1), -100.0))
    else:
        # General (soft-label-safe) two-log form, PyTorch log clamp at -100.
        log_p0 = jnp.maximum(jnp.log(p0), -100.0)
        log_1mp0 = jnp.maximum(jnp.log(1.0 - p0), -100.0)
        log_p1 = jnp.maximum(jnp.log(p1), -100.0)
        log_1mp1 = jnp.maximum(jnp.log(1.0 - p1), -100.0)
        bce = -(t * log_p0 + (1.0 - t) * log_1mp0) \
              - ((1.0 - t) * log_p1 + t * log_1mp1)

    # Mask out padded tail samples (sample index >= n_valid); cheap VPU select.
    row = jax.lax.broadcasted_iota(jnp.int32, (tile_rows, _LANES), 0)
    lane = jax.lax.broadcasted_iota(jnp.int32, (tile_rows, _LANES), 1)
    sample = (step * tile_rows + row) * _LANES + lane
    bce = jnp.where(sample < n_valid, bce, 0.0)

    acc_ref[0] += jnp.sum(bce)

    @pl.when(step == pl.num_programs(0) - 1)
    def _finalize():
        bce_mean = acc_ref[0] * jnp.float32(1.0 / (2.0 * n_valid))
        bce_exp = jnp.exp(-bce_mean)
        focal = alpha * (1.0 - bce_exp) ** gamma * bce_mean
        out_ref[0] = focal


def focal_loss(inputs, targets, alpha=0.8, gamma=5, smooth=1, *,
               hard_labels=True, max_tile_rows=_MAX_TILE_ROWS):
    """inputs: (N, 2) probabilities in (0, 1); targets: (N,) binary labels."""
    del smooth  # unused by the reference forward as well
    n, c = inputs.shape
    assert c == 2, "FocalLoss reference expects 2-column probabilities"

    m = pl.cdiv(n, _LANES)                      # rows of the lane-dense slab
    if m <= max_tile_rows:
        tile_rows = m                           # single block: full-extent dim is OK
    else:
        tile_rows = max(8, (max_tile_rows // 8) * 8)   # keep sublane-aligned
    n_blocks = pl.cdiv(m, tile_rows)
    m_pad = n_blocks * tile_rows
    n_pad = m_pad * _LANES

    # Lane-dense layout plumbing (layout only; targets are NOT expanded to (N,2)):
    #   (N, 2) -> transpose -> (2, N) -> pad lanes -> (2, M_pad, 128)
    p_t = jnp.pad(inputs.T, ((0, 0), (0, n_pad - n)), constant_values=0.5)
    p_t = p_t.reshape(2, m_pad, _LANES)
    t_pad = jnp.pad(targets.astype(jnp.float32), (0, n_pad - n))
    t_pad = t_pad.reshape(1, m_pad, _LANES)

    # Integer gamma -> exact repeated-multiply power instead of exp(gamma*log(x)).
    gamma_static = int(gamma) if float(gamma) == int(gamma) else float(gamma)
    kernel = functools.partial(
        _focal_loss_kernel,
        alpha=float(alpha), gamma=gamma_static, n_valid=n,
        tile_rows=tile_rows, hard_labels=bool(hard_labels))

    out = pl.pallas_call(
        kernel,
        out_shape=jax.ShapeDtypeStruct((1,), jnp.float32),
        grid_spec=pltpu.PrefetchScalarGridSpec(
            num_scalar_prefetch=0,
            grid=(n_blocks,),
            in_specs=[
                pl.BlockSpec((2, tile_rows, _LANES), lambda i: (0, i, 0)),
                pl.BlockSpec((1, tile_rows, _LANES), lambda i: (0, i, 0)),
            ],
            out_specs=pl.BlockSpec(memory_space=pltpu.MemorySpace.SMEM),
            scratch_shapes=[pltpu.SMEM((1,), jnp.float32)],
        ),
        compiler_params=pltpu.CompilerParams(
            dimension_semantics=("arbitrary",)),
    )(p_t, t_pad)
    return out[0]


def focal_loss_ref(inputs, targets, alpha=0.8, gamma=5):
    """Pure-JAX reference mirroring the PyTorch module."""
    t = targets.astype(jnp.float32)
    targets2 = jnp.concatenate([t[:, None], 1.0 - t[:, None]], axis=1)
    p = inputs.astype(jnp.float32)
    log_p = jnp.maximum(jnp.log(p), -100.0)
    log_1mp = jnp.maximum(jnp.log(1.0 - p), -100.0)
    bce = jnp.mean(-(targets2 * log_p + (1.0 - targets2) * log_1mp))
    return alpha * (1.0 - jnp.exp(-bce)) ** gamma * bce


if __name__ == "__main__":
    key = jax.random.PRNGKey(0)
    k_in, k_tgt, k_in2, k_tgt2 = jax.random.split(key, 4)

    # Small primary case: N=8 samples, 2 classes.
    N = 8
    probs = jax.nn.sigmoid(jax.random.normal(k_in, (N, 2), dtype=jnp.float32))
    labels = jax.random.bernoulli(k_tgt, 0.5, (N,)).astype(jnp.float32)

    out = jax.block_until_ready(focal_loss(probs, labels))
    ref = focal_loss_ref(probs, labels)
    assert jnp.allclose(out, ref, rtol=1e-5, atol=1e-6), (out, ref)

    # Non-multiple-of-128 N + multi-block grid: exercises padding mask, the
    # SMEM accumulator across grid steps, and both BCE code paths.
    N2 = 3000
    probs2 = jax.nn.sigmoid(jax.random.normal(k_in2, (N2, 2), dtype=jnp.float32))
    labels2 = jax.random.bernoulli(k_tgt2, 0.5, (N2,)).astype(jnp.float32)
    ref2 = focal_loss_ref(probs2, labels2)

    out2 = jax.block_until_ready(focal_loss(probs2, labels2, max_tile_rows=8))
    assert jnp.allclose(out2, ref2, rtol=1e-5, atol=1e-6), (out2, ref2)

    out3 = jax.block_until_ready(
        focal_loss(probs2, labels2, hard_labels=False, max_tile_rows=8))
    assert jnp.allclose(out3, ref2, rtol=1e-5, atol=1e-6), (out3, ref2)

    print("KERNEL_OK")
</pallas_src>

<mosaic_0001>
module attributes {stable_mosaic.version = 11 : i64} {
  func.func @_focal_loss_kernel(%arg0: i32, %arg1: memref<2x1x128xf32, #tpu.memory_space<vmem>>, %arg2: memref<1x1x128xf32, #tpu.memory_space<vmem>>, %arg3: memref<1xf32, #tpu.memory_space<smem>>, %arg4: memref<1xf32, #tpu.memory_space<smem>>) attributes {dimension_semantics = [#tpu.dimension_semantics<arbitrary>], iteration_bounds = array<i64: 1>, scalar_prefetch = 0 : i64, scratch_operands = 1 : i64, tpu.core_type = #tpu.core_type<tc>, window_params = [{transform_indices = @transform_0, window_bounds = array<i64: 2, 1, 128>}, {transform_indices = @transform_1, window_bounds = array<i64: 1, 1, 128>}, {transform_indices = @transform_2, window_bounds = array<i64: 1>}]} {
    %c0_i32 = arith.constant 0 : i32
    %0 = arith.cmpi eq, %arg0, %c0_i32 : i32
    %1 = arith.extui %0 : i1 to i32
    %c0_i32_0 = arith.constant 0 : i32
    %2 = arith.cmpi ne, %1, %c0_i32_0 : i32
    scf.if %2 {
      %cst_20 = arith.constant 0.000000e+00 : f32
      %c0_21 = arith.constant 0 : index
      %50 = memref.load %arg4[%c0_21] : memref<1xf32, #tpu.memory_space<smem>>
      memref.store %cst_20, %arg4[%c0_21] : memref<1xf32, #tpu.memory_space<smem>>
    } else {
    }
    %c0 = arith.constant 0 : index
    %c0_1 = arith.constant 0 : index
    %c0_2 = arith.constant 0 : index
    %3 = vector.load %arg1[%c0, %c0_1, %c0_2] : memref<2x1x128xf32, #tpu.memory_space<vmem>>, vector<1x1x128xf32>
    %4 = vector.shape_cast %3 : vector<1x1x128xf32> to vector<1x128xf32>
    %c1 = arith.constant 1 : index
    %c0_3 = arith.constant 0 : index
    %c0_4 = arith.constant 0 : index
    %5 = vector.load %arg1[%c1, %c0_3, %c0_4] : memref<2x1x128xf32, #tpu.memory_space<vmem>>, vector<1x1x128xf32>
    %6 = vector.shape_cast %5 : vector<1x1x128xf32> to vector<1x128xf32>
    %c0_5 = arith.constant 0 : index
    %c0_6 = arith.constant 0 : index
    %c0_7 = arith.constant 0 : index
    %7 = vector.load %arg2[%c0_5, %c0_6, %c0_7] : memref<1x1x128xf32, #tpu.memory_space<vmem>>, vector<1x1x128xf32>
    %8 = vector.shape_cast %7 : vector<1x1x128xf32> to vector<1x128xf32>
    %cst = arith.constant 5.000000e-01 : f32
    %9 = vector.broadcast %cst : f32 to vector<1x128xf32>
    %10 = arith.cmpf ogt, %8, %9 : vector<1x128xf32>
    %cst_8 = arith.constant 1.000000e+00 : f32
    %11 = vector.broadcast %cst_8 : f32 to vector<1x128xf32>
    %12 = arith.subf %11, %4 : vector<1x128xf32>
    %13 = arith.select %10, %4, %12 : vector<1x128xi1>, vector<1x128xf32>
    %cst_9 = arith.constant 5.000000e-01 : f32
    %14 = vector.broadcast %cst_9 : f32 to vector<1x128xf32>
    %15 = arith.cmpf ogt, %8, %14 : vector<1x128xf32>
    %cst_10 = arith.constant 1.000000e+00 : f32
    %16 = vector.broadcast %cst_10 : f32 to vector<1x128xf32>
    %17 = arith.subf %16, %6 : vector<1x128xf32>
    %18 = arith.select %15, %17, %6 : vector<1x128xi1>, vector<1x128xf32>
    %19 = math.log %13 : vector<1x128xf32>
    %cst_11 = arith.constant -1.000000e+02 : f32
    %20 = vector.broadcast %cst_11 : f32 to vector<1x128xf32>
    %21 = arith.maximumf %19, %20 : vector<1x128xf32>
    %22 = math.log %18 : vector<1x128xf32>
    %cst_12 = arith.constant -1.000000e+02 : f32
    %23 = vector.broadcast %cst_12 : f32 to vector<1x128xf32>
    %24 = arith.maximumf %22, %23 : vector<1x128xf32>
    %25 = arith.addf %21, %24 : vector<1x128xf32>
    %cst_13 = arith.constant 0.000000e+00 : f32
    %26 = vector.broadcast %cst_13 : f32 to vector<1x128xf32>
    %27 = arith.subf %26, %25 : vector<1x128xf32>
    %28 = tpu.iota {dimensions = array<i32: 0>} : vector<1x128xi32>
    %29 = tpu.iota {dimensions = array<i32: 1>} : vector<1x128xi32>
    %c1_i32 = arith.constant 1 : i32
    %30 = arith.muli %arg0, %c1_i32 : i32
    %31 = vector.broadcast %30 : i32 to vector<1x128xi32>
    %32 = arith.addi %31, %28 : vector<1x128xi32>
    %c128_i32 = arith.constant 128 : i32
    %33 = vector.broadcast %c128_i32 : i32 to vector<1x128xi32>
    %34 = arith.muli %32, %33 : vector<1x128xi32>
    %35 = arith.addi %34, %29 : vector<1x128xi32>
    %c8_i32 = arith.constant 8 : i32
    %36 = vector.broadcast %c8_i32 : i32 to vector<1x128xi32>
    %37 = arith.cmpi slt, %35, %36 : vector<1x128xi32>
    %cst_14 = arith.constant 0.000000e+00 : f32
    %38 = vector.broadcast %cst_14 : f32 to vector<1x128xf32>
    %39 = arith.select %37, %27, %38 : vector<1x128xi1>, vector<1x128xf32>
    %c0_15 = arith.constant 0 : index
    %40 = memref.load %arg4[%c0_15] : memref<1xf32, #tpu.memory_space<smem>>
    %41 = vector.shape_cast %39 : vector<1x128xf32> to vector<1x1x128xf32>
    %cst_16 = arith.constant dense<0.000000e+00> : vector<1xf32>
    %42 = vector.multi_reduction <add>, %41, %cst_16 [1, 2] : vector<1x1x128xf32> to vector<1xf32>
    %43 = vector.shape_cast %42 : vector<1xf32> to vector<1x1x1xf32>
    %44 = vector.extract %43[0, 0, 0] : f32 from vector<1x1x1xf32>
    %45 = arith.addf %40, %44 : f32
    %c0_17 = arith.constant 0 : index
    %46 = memref.load %arg4[%c0_17] : memref<1xf32, #tpu.memory_space<smem>>
    memref.store %45, %arg4[%c0_17] : memref<1xf32, #tpu.memory_space<smem>>
    %c0_i32_18 = arith.constant 0 : i32
    %47 = arith.cmpi eq, %arg0, %c0_i32_18 : i32
    %48 = arith.extui %47 : i1 to i32
    %c0_i32_19 = arith.constant 0 : i32
    %49 = arith.cmpi ne, %48, %c0_i32_19 : i32
    scf.if %49 {
      %c0_20 = arith.constant 0 : index
      %50 = memref.load %arg4[%c0_20] : memref<1xf32, #tpu.memory_space<smem>>
      %cst_21 = arith.constant 6.250000e-02 : f32
      %51 = arith.mulf %50, %cst_21 : f32
      %cst_22 = arith.constant 0.000000e+00 : f32
      %52 = arith.subf %cst_22, %51 : f32
      %53 = math.exp %52 : f32
      %cst_23 = arith.constant 1.000000e+00 : f32
      %54 = arith.subf %cst_23, %53 : f32
      %55 = arith.mulf %54, %54 : f32
      %56 = arith.mulf %55, %55 : f32
      %57 = arith.mulf %54, %56 : f32
      %cst_24 = arith.constant 8.000000e-01 : f32
      %58 = arith.mulf %cst_24, %57 : f32
      %59 = arith.mulf %58, %51 : f32
      %c0_25 = arith.constant 0 : index
      %60 = memref.load %arg3[%c0_25] : memref<1xf32, #tpu.memory_space<smem>>
      memref.store %59, %arg3[%c0_25] : memref<1xf32, #tpu.memory_space<smem>>
    } else {
    }
    return
  }
  func.func @transform_0(%arg0: i32) -> (i32, i32, i32) {
    %c0_i32 = arith.constant 0 : i32
    %c0_i32_0 = arith.constant 0 : i32
    %c0_i32_1 = arith.constant 0 : i32
    return %c0_i32, %arg0, %c0_i32_0 : i32, i32, i32
  }
  func.func @transform_1(%arg0: i32) -> (i32, i32, i32) {
    %c0_i32 = arith.constant 0 : i32
    %c0_i32_0 = arith.constant 0 : i32
    %c0_i32_1 = arith.constant 0 : i32
    return %c0_i32, %arg0, %c0_i32_0 : i32, i32, i32
  }
  func.func @transform_2(%arg0: i32) -> i32 {
    %c0_i32 = arith.constant 0 : i32
    %c0_i32_0 = arith.constant 0 : i32
    return %c0_i32 : i32
  }
}

</mosaic_0001>

<bundles_post_ra>
// kernel: tpu_custom_call.1
= control target key start
LH: loop header
LB: loop body
LE: loop exit
PB: predicated region body
PF: predicated region fallthrough
CT: control target
= control target key end

     0   :  { %7 = vsyncpa [#allocation4], 0  ;;  %s180_s0 = inlined_call_operand.hbm [shape: f32[2,1,128], index: 0, kind: input, shape index: {}]   ;;  %s181_s1 = inlined_call_operand.vmem [shape: f32[1,1,128], index: 1, kind: input, shape index: {}]   ;;  %s182_s2 = inlined_call_operand.hbm [shape: f32[1], index: 2, kind: output, shape index: {}]  }
   0x1   :  { %8 = vsyncpa [#allocation5], 0  ;;  %s152_s9 = smov [#allocation3]  }
   0x2   :  { %s14_s10 = sshll.u32 %s152_s9, 4  ;;  %s15_s10 = int_to_ptr.vmem [resolvable:$true] %s14_s10 }
   0x3   :  { %s128_s11 = scalar_lea.vmem %s15_s10, 32  ;;  %p133_p1 = scmp.lt.s32.totalorder %s15_s10, %s15_s10 }
   0x4   :  { %p129_p0 = scmp.ne.s32.totalorder %s15_s10, %s128_s11  ;;  %p134_p2 = scmp.lt.s32.totalorder %s128_s11, %s128_s11 }
   0x6   :  { %p135_p3 = por %p134_p2, %p133_p1 }
   0x8   :  { %p136_p4 = pnand %p135_p3, %p129_p0 }
   0xa   :  { %139 = shalt.err (!%p136_p4)
}
   0xb   :  { %s153_s12 = smov 16   ;;  %s154_s13 = smov 1  }
   0xc   :  { %20 = dma.hbm_to_vmem [thread:$0]  %s180_s0, 32, %s15_s10, [#allocation4], %s153_s12, %s153_s12, %s154_s13  }
   0xd   :  { %148 = dma.done.wait [#allocation4], 32  }
   0xe   :  { %149 = vsyncadd [#allocation4], 4294967264  ;;  %v32_v0 = vld [vmem:[#allocation3] sm:$0x1]  ;;  %v34_v1 = vld [vmem:[#allocation3 + $0x1] sm:$0x1]  ;;  %v49_v7 = vlaneseq }
   0xf   :  { %v35_v2 = vld [vmem:[%s181_s1] sm:$0x1]  ;;  %v37_v3 = vsub.f32 1.0, %v32_v0  ;;  %v39_v4 = vsub.f32 1.0, %v34_v1  ;;  %vm60_vm2 = vcmask 1040384   ;;  %s155_s26 = smov [#allocation6]  }
  0x10   :  { %vm36_vm0 = vcmp.gt.f32.partialorder %v35_v2, 0.5  ;;  %v50_v8 = vshrl.u32 %v49_v7, 7  ;;  %v52_v9 = vand.u32 127, %v49_v7 }
  0x11   :  { %v38_v5 = vsel %vm36_vm0, %v32_v0, %v37_v3  ;;  %v40_v6 = vsel %vm36_vm0, %v39_v4, %v34_v1 }
  0x12   :  { %114 = vlog2.f32 %v38_v5  ;;  %v55_v10 = vmul.u32 128, %v50_v8 }
  0x13   :  { %116 = vlog2.f32 %v40_v6 }
  0x14   :  { %v56_v16 = vadd.s32 %v55_v10, %v52_v9 }
  0x16   :  { %vm57_vm1 = vcmp.lt.s32.totalorder %v56_v16, 8 }
  0x1f   :  { %v115_v11 = vpop.eup %114 }
  0x20   :  { %v117_v12 = vpop.eup %116  ;;  %v42_v13 = vmul.f32 0.6931472, %v115_v11 }
  0x21   :  { %v45_v14 = vmul.f32 0.6931472, %v117_v12 }
  0x22   :  { %v43_v15 = vmax.f32 %v42_v13, -100.0 }
  0x23   :  { %v46_v17 = vmax.f32 %v45_v14, -100.0 }
  0x25   :  { %v47_v18 = vadd.f32 %v46_v17, %v43_v15 }
  0x27   :  { %v48_v19 = vsub.f32 0.0, %v47_v18 }
  0x29   :  { %v58_v20 = vsel %vm57_vm1, %v48_v19, 0.0 }
  0x2a   :  { %v61_v21 = vsel %vm60_vm2, %v58_v20, 0.0 }
  0x2b   :  { %62 = vadd.xlane.f32.xlu0 %v61_v21 }
  0xb4   :  { %v63_v22 = vpop.xlane.xlu0 %62 }
  0xb5   :  { %v64_v23 = vrot.slane %v63_v22, 4 }
  0xb7   :  { %v65_v24 = vadd.f32 %v64_v23, %v63_v22 }
  0xb9   :  { %v66_v25 = vrot.slane %v65_v24, 2 }
  0xbb   :  { %v67_v26 = vadd.f32 %v66_v25, %v65_v24 }
  0xbd   :  { %v68_v27 = vrot.slane %v67_v26, 1 }
  0xbf   :  { %v69_v28 = vadd.f32 %v68_v27, %v67_v26 }
  0xc1   :  { %106 = vpush %v69_v28 }
  0xf2   :  { %s107_s0 = spop %106 }
  0xf3   :  { %s78_s1 = smul.f32 0.0625, %s107_s0 }
  0xf5   :  { %s79_s18 = ssub.f32 0.0, %s78_s1 }
  0xf7   :  { %v80_v29 = vstv %s79_s18 }
  0xf8   :  { %v81_v30 = vmul.f32 1.442695, %v80_v29 }
  0xfa   :  { %118 = vpow2.f32 %v81_v30 }
 0x107   :  { %v119_v31 = vpop.eup %118 }
 0x108   :  { %108 = vpush %v119_v31 }
 0x139   :  { %s109_s19 = spop %108 }
 0x13a   :  { %s84_s20 = ssub.f32 1.0, %s109_s19 }
 0x13c   :  { %s85_s21 = smul.f32 %s84_s20, %s84_s20 }
 0x13e   :  { %s86_s22 = smul.f32 %s85_s21, %s85_s21 }
 0x140   :  { %s87_s23 = smul.f32 %s86_s22, %s84_s20 }
 0x142   :  { %s88_s24 = smul.f32 0.8, %s87_s23 }
 0x144   :  { %s89_s25 = smul.f32 %s88_s24, %s78_s1 }
 0x146   :  { %91 = sst [smem:[#allocation6]] %s89_s25 }
 0x147   :  { %99 = dma.smem_to_hbm %s155_s26, 16, %s182_s2, [#allocation5]  }
 0x148   :  { %150 = dma.done.wait [#allocation5], 16  }
 0x149   :  { %151 = vsyncadd [#allocation5], 4294967280 }
 0x14a   :  { %103 = sfence }
 0x14b   :  { %104 = vsyncpa [#allocation4], 1 }
 0x14c   :  { %105 = vsyncpa [#allocation5], 1 }

</bundles_post_ra>
